<compile_context>
chip_gen: v6e
topology: v6e:2x2x1
jax: 0.10.0
libtpu: 0.0.40
codegen_flags: <defaults>
</compile_context>

<pallas_src>
import jax
import jax.numpy as jnp
from jax.experimental import pallas as pl
from jax.experimental.pallas import tpu as pltpu

LANE = 128


def mlp_kernel(x_ref, w1_ref, w2_ref, w3_ref, w4_ref, b_ref, o_ref):
    # x: (TB, 3072) f32 -> bf16 for the MXU; weights already bf16.
    h = x_ref[...].astype(jnp.bfloat16)
    for li, w_ref in enumerate((w1_ref, w2_ref, w3_ref, w4_ref)):
        out_w = w_ref.shape[1]
        h = jnp.dot(h, w_ref[...], preferred_element_type=jnp.float32)
        h = h + b_ref[li:li + 1, :out_w]          # bias add in f32
        if li < 3:
            h = jnp.maximum(h, 0.0)               # ReLU in f32 (v5e-friendly)
            h = h.astype(jnp.bfloat16)            # feed next MXU pass as bf16
    o_ref[...] = h                                # lane-dense (last dim = 128)


def base_model_forward(x_nchw, params, n_classes, *, batch_tile=256):
    """Equivalent of BaseModel.forward: flatten NCHW input, run the fused MLP."""
    w1, w2, w3, w4, b_packed = params
    B = x_nchw.shape[0]
    in_dim = w1.shape[0]
    out_pad = w4.shape[1]                         # padded (128) output width
    x2d = x_nchw.reshape(B, in_dim)               # == input.view(-1, input_size)

    if B <= batch_tile:
        # Tiny problem: everything fits in VMEM -> single shot, no grid, no
        # per-step grid overhead.
        out = pl.pallas_call(
            mlp_kernel,
            out_shape=jax.ShapeDtypeStruct((B, out_pad), jnp.float32),
        )(x2d, w1, w2, w3, w4, b_packed)
    else:
        # Batch-tiled path: amortize the one-time weight DMA over batch tiles
        # and let BlockSpec pipelining overlap x-tile DMA with compute.
        nb = pl.cdiv(B, batch_tile)
        Bp = nb * batch_tile
        if Bp != B:
            x2d = jnp.pad(x2d, ((0, Bp - B), (0, 0)))
        const = lambda shape: pl.BlockSpec(shape, lambda i: (0, 0))
        out = pl.pallas_call(
            mlp_kernel,
            out_shape=jax.ShapeDtypeStruct((Bp, out_pad), jnp.float32),
            grid=(nb,),
            in_specs=[
                pl.BlockSpec((batch_tile, in_dim), lambda i: (i, 0)),
                const(w1.shape), const(w2.shape), const(w3.shape),
                const(w4.shape), const(b_packed.shape),
            ],
            out_specs=pl.BlockSpec((batch_tile, out_pad), lambda i: (i, 0)),
            compiler_params=pltpu.CompilerParams(
                dimension_semantics=("parallel",)),
        )(x2d, w1, w2, w3, w4, b_packed)
        out = out[:B]
    return out[:, :n_classes]                     # drop the lane padding


def init_params(key, input_size, hidden_dim, n_classes):
    """nn.Linear-style init (uniform +-1/sqrt(fan_in)), weights stored (in, out)
    in bf16 and zero-padded to lane-friendly widths; biases packed (4, 128) f32.
    Zero padding keeps semantics identical: padded columns produce 0 activations
    and padded rows contribute nothing."""
    def round_up(n, m):
        return ((n + m - 1) // m) * m

    dims = [input_size, hidden_dim * 2, hidden_dim, hidden_dim // 2, n_classes]
    # keep layer-1 output width unpadded (it scales the dominant 3072-wide w1);
    # pad layers 2-4 outputs to full 128-lane widths.
    pdims = [dims[0], dims[1]] + [round_up(d, LANE) for d in dims[2:]]
    bw = round_up(max(pdims[1:]), LANE)

    ws, b_rows = [], []
    for i in range(4):
        fan_in, fan_out = dims[i], dims[i + 1]
        key, wk, bk = jax.random.split(key, 3)
        bound = fan_in ** -0.5                    # torch.nn.Linear init scale
        w = jax.random.uniform(wk, (fan_in, fan_out), jnp.float32, -bound, bound)
        b = jax.random.uniform(bk, (fan_out,), jnp.float32, -bound, bound)
        wp = jnp.zeros((pdims[i], pdims[i + 1]), jnp.float32)
        wp = wp.at[:fan_in, :fan_out].set(w)
        ws.append(wp.astype(jnp.bfloat16))        # bf16 weights: halve HBM bytes
        b_rows.append(jnp.zeros((bw,), jnp.float32).at[:fan_out].set(b))
    b_packed = jnp.stack(b_rows, axis=0)          # (4, 128) f32, single DMA
    return tuple(ws) + (b_packed,)


def ref_forward(x_nchw, params, n_classes):
    """Pure-JAX reference with identical numerics (bf16 weights / activations)."""
    w1, w2, w3, w4, b = params
    B = x_nchw.shape[0]
    h = x_nchw.reshape(B, w1.shape[0]).astype(jnp.bfloat16).astype(jnp.float32)
    for li, w in enumerate((w1, w2, w3, w4)):
        h = h @ w.astype(jnp.float32) + b[li, :w.shape[1]]
        if li < 3:
            h = jnp.maximum(h, 0.0).astype(jnp.bfloat16).astype(jnp.float32)
    return h[:, :n_classes]


if __name__ == "__main__":
    C, H, W = 3, 32, 32
    input_size = C * H * W                        # 3072, as in the module
    hidden_dim = 32
    n_classes = 10

    key = jax.random.PRNGKey(0)
    key, k_small, k_big = jax.random.split(key, 3)
    params = init_params(key, input_size, hidden_dim, n_classes)

    # Small batch -> no-grid single-shot path.
    x_small = jax.random.normal(k_small, (8, C, H, W), jnp.float32)
    out_small = jax.block_until_ready(base_model_forward(x_small, params, n_classes))
    ref_small = ref_forward(x_small, params, n_classes)
    assert out_small.shape == (8, n_classes)
    assert jnp.allclose(out_small, ref_small, atol=2e-3, rtol=2e-3)

    # Larger batch (non-multiple of the tile) -> batch-tiled path with
    # VMEM-resident weights and a "parallel" batch grid axis.
    x_big = jax.random.normal(k_big, (260, C, H, W), jnp.float32)
    out_big = jax.block_until_ready(
        base_model_forward(x_big, params, n_classes, batch_tile=256))
    ref_big = ref_forward(x_big, params, n_classes)
    assert out_big.shape == (260, n_classes)
    assert jnp.allclose(out_big, ref_big, atol=2e-3, rtol=2e-3)

    print("KERNEL_OK")
</pallas_src>

<mosaic_0001>
module attributes {stable_mosaic.version = 11 : i64} {
  func.func @mlp_kernel(%arg0: memref<8x3072xf32, #tpu.memory_space<vmem>>, %arg1: memref<3072x64xbf16, #tpu.memory_space<vmem>>, %arg2: memref<64x128xbf16, #tpu.memory_space<vmem>>, %arg3: memref<128x128xbf16, #tpu.memory_space<vmem>>, %arg4: memref<128x128xbf16, #tpu.memory_space<vmem>>, %arg5: memref<4x128xf32, #tpu.memory_space<vmem>>, %arg6: memref<8x128xf32, #tpu.memory_space<vmem>>) attributes {dimension_semantics = [], scalar_prefetch = 0 : i64, scratch_operands = 0 : i64, tpu.core_type = #tpu.core_type<tc>} {
    %c0 = arith.constant 0 : index
    %c0_0 = arith.constant 0 : index
    %0 = vector.load %arg0[%c0, %c0_0] : memref<8x3072xf32, #tpu.memory_space<vmem>>, vector<8x3072xf32>
    %1 = arith.truncf %0 : vector<8x3072xf32> to vector<8x3072xbf16>
    %c0_1 = arith.constant 0 : index
    %c0_2 = arith.constant 0 : index
    %2 = vector.load %arg1[%c0_1, %c0_2] : memref<3072x64xbf16, #tpu.memory_space<vmem>>, vector<3072x64xbf16>
    %cst = arith.constant dense<0.000000e+00> : vector<8x64xf32>
    %3 = tpu.matmul %1, %2, %cst {dimension_numbers = #tpu.dot_dimension_numbers<[1], [0], [0], [1], [0, 0, 1, 1], [], []>} : vector<8x3072xbf16>, vector<3072x64xbf16>, vector<8x64xf32> -> vector<8x64xf32>
    %c0_3 = arith.constant 0 : index
    %c0_4 = arith.constant 0 : index
    %4 = vector.load %arg5[%c0_3, %c0_4] : memref<4x128xf32, #tpu.memory_space<vmem>>, vector<1x64xf32>
    %5 = vector.broadcast %4 : vector<1x64xf32> to vector<8x64xf32>
    %6 = arith.addf %3, %5 : vector<8x64xf32>
    %cst_5 = arith.constant 0.000000e+00 : f32
    %7 = vector.broadcast %cst_5 : f32 to vector<8x64xf32>
    %8 = arith.maximumf %6, %7 : vector<8x64xf32>
    %9 = arith.truncf %8 : vector<8x64xf32> to vector<8x64xbf16>
    %c0_6 = arith.constant 0 : index
    %c0_7 = arith.constant 0 : index
    %10 = vector.load %arg2[%c0_6, %c0_7] : memref<64x128xbf16, #tpu.memory_space<vmem>>, vector<64x128xbf16>
    %cst_8 = arith.constant dense<0.000000e+00> : vector<8x128xf32>
    %11 = tpu.matmul %9, %10, %cst_8 {dimension_numbers = #tpu.dot_dimension_numbers<[1], [0], [0], [1], [0, 0, 1, 1], [], []>} : vector<8x64xbf16>, vector<64x128xbf16>, vector<8x128xf32> -> vector<8x128xf32>
    %c1 = arith.constant 1 : index
    %c0_9 = arith.constant 0 : index
    %12 = vector.load %arg5[%c1, %c0_9] : memref<4x128xf32, #tpu.memory_space<vmem>>, vector<1x128xf32>
    %13 = vector.broadcast %12 : vector<1x128xf32> to vector<8x128xf32>
    %14 = arith.addf %11, %13 : vector<8x128xf32>
    %cst_10 = arith.constant 0.000000e+00 : f32
    %15 = vector.broadcast %cst_10 : f32 to vector<8x128xf32>
    %16 = arith.maximumf %14, %15 : vector<8x128xf32>
    %17 = arith.truncf %16 : vector<8x128xf32> to vector<8x128xbf16>
    %c0_11 = arith.constant 0 : index
    %c0_12 = arith.constant 0 : index
    %18 = vector.load %arg3[%c0_11, %c0_12] : memref<128x128xbf16, #tpu.memory_space<vmem>>, vector<128x128xbf16>
    %cst_13 = arith.constant dense<0.000000e+00> : vector<8x128xf32>
    %19 = tpu.matmul %17, %18, %cst_13 {dimension_numbers = #tpu.dot_dimension_numbers<[1], [0], [0], [1], [0, 0, 1, 1], [], []>} : vector<8x128xbf16>, vector<128x128xbf16>, vector<8x128xf32> -> vector<8x128xf32>
    %c2 = arith.constant 2 : index
    %c0_14 = arith.constant 0 : index
    %20 = vector.load %arg5[%c2, %c0_14] : memref<4x128xf32, #tpu.memory_space<vmem>>, vector<1x128xf32>
    %21 = vector.broadcast %20 : vector<1x128xf32> to vector<8x128xf32>
    %22 = arith.addf %19, %21 : vector<8x128xf32>
    %cst_15 = arith.constant 0.000000e+00 : f32
    %23 = vector.broadcast %cst_15 : f32 to vector<8x128xf32>
    %24 = arith.maximumf %22, %23 : vector<8x128xf32>
    %25 = arith.truncf %24 : vector<8x128xf32> to vector<8x128xbf16>
    %c0_16 = arith.constant 0 : index
    %c0_17 = arith.constant 0 : index
    %26 = vector.load %arg4[%c0_16, %c0_17] : memref<128x128xbf16, #tpu.memory_space<vmem>>, vector<128x128xbf16>
    %cst_18 = arith.constant dense<0.000000e+00> : vector<8x128xf32>
    %27 = tpu.matmul %25, %26, %cst_18 {dimension_numbers = #tpu.dot_dimension_numbers<[1], [0], [0], [1], [0, 0, 1, 1], [], []>} : vector<8x128xbf16>, vector<128x128xbf16>, vector<8x128xf32> -> vector<8x128xf32>
    %c3 = arith.constant 3 : index
    %c0_19 = arith.constant 0 : index
    %28 = vector.load %arg5[%c3, %c0_19] : memref<4x128xf32, #tpu.memory_space<vmem>>, vector<1x128xf32>
    %29 = vector.broadcast %28 : vector<1x128xf32> to vector<8x128xf32>
    %30 = arith.addf %27, %29 : vector<8x128xf32>
    %c0_20 = arith.constant 0 : index
    %c0_21 = arith.constant 0 : index
    %31 = vector.load %arg6[%c0_20, %c0_21] : memref<8x128xf32, #tpu.memory_space<vmem>>, vector<8x128xf32>
    tpu.vector_store %arg6[%c0_20, %c0_21], %30 {strides = array<i32>} : memref<8x128xf32, #tpu.memory_space<vmem>>, vector<8x128xf32>,
    return
  }
}

</mosaic_0001>

<bundles_post_ra>
// kernel: tpu_custom_call.1
= control target key start
LH: loop header
LB: loop body
LE: loop exit
PB: predicated region body
PF: predicated region fallthrough
CT: control target
= control target key end

     0   :  { %s3994_s0 = inlined_call_operand.vmem [shape: f32[8,3072], index: 0, kind: input, shape index: {}]   ;;  %s3995_s1 = inlined_call_operand.vmem [shape: bf16[3072,64], index: 1, kind: input, shape index: {}]   ;;  %s3996_s2 = inlined_call_operand.vmem [shape: bf16[64,128], index: 2, kind: input, shape index: {}]   ;;  %s3997_s3 = inlined_call_operand.vmem [shape: bf16[128,128], index: 3, kind: input, shape index: {}]   ;;  %s3998_s4 = inlined_call_operand.vmem [shape: bf16[128,128], index: 4, kind: input, shape index: {}]   ;;  %s3999_s5 = inlined_call_operand.vmem [shape: f32[4,128], index: 5, kind: input, shape index: {}]   ;;  %s4000_s6 = inlined_call_operand.hbm [shape: f32[8,128], index: 6, kind: output, shape index: {}]  }
   0x1   :  { %v2973_v0 = vld [vmem:[%s3995_s1 + $0x78] sm:$0xff]   ;;  %v2977_v4 = vld [vmem:[%s3995_s1 + $0x70] sm:$0xff]   ;;  %v2981_v8 = vld [vmem:[%s3995_s1 + $0x68] sm:$0xff]  }
   0x2   :  { %v2974_v1 = vld [vmem:[%s3995_s1 + $0xf8] sm:$0xff]   ;;  %2631 = vmatprep.subr.bf16.mxu0 %v2973_v0  ;;  %v2978_v5 = vld [vmem:[%s3995_s1 + $0xf0] sm:$0xff]   ;;  %v2982_v9 = vld [vmem:[%s3995_s1 + $0xe8] sm:$0xff]  }
   0x3   :  { %v2975_v2 = vld [vmem:[%s3995_s1 + $0x38] sm:$0xff]   ;;  %2653 = vmatprep.subr.bf16.mxu1 %v2974_v1  ;;  %v2979_v6 = vld [vmem:[%s3995_s1 + $0x30] sm:$0xff]   ;;  %v2983_v10 = vld [vmem:[%s3995_s1 + $0x28] sm:$0xff]  }
   0x4   :  { %v2976_v3 = vld [vmem:[%s3995_s1 + $0xb8] sm:$0xff]   ;;  %2632 = vmatpush3.bf16.msra.mxu0 %v2975_v2  ;;  %v2980_v7 = vld [vmem:[%s3995_s1 + $0xb0] sm:$0xff]   ;;  %v2984_v11 = vld [vmem:[%s3995_s1 + $0xa8] sm:$0xff]  }
   0x5   :  { %2654 = vmatpush3.bf16.msra.mxu1 %v2976_v3  ;;  %2633 = vmatprep.subr.bf16.mxu0 %v2977_v4  ;;  %v2985_v12 = vld [vmem:[%s3995_s1 + $0x60] sm:$0xff]   ;;  %v2989_v16 = vld [vmem:[%s3995_s1 + $0x58] sm:$0xff]   ;;  %v2993_v20 = vld [vmem:[%s3995_s1 + $0x50] sm:$0xff]  }
   0x6   :  { %2655 = vmatprep.subr.bf16.mxu1 %v2978_v5  ;;  %v2986_v13 = vld [vmem:[%s3995_s1 + $0xe0] sm:$0xff]   ;;  %v2990_v17 = vld [vmem:[%s3995_s1 + $0xd8] sm:$0xff]   ;;  %v2994_v21 = vld [vmem:[%s3995_s1 + $0xd0] sm:$0xff]  }
   0x7   :  { %v2987_v14 = vld [vmem:[%s3995_s1 + $0x20] sm:$0xff]   ;;  %v2991_v18 = vld [vmem:[%s3995_s1 + $0x18] sm:$0xff]   ;;  %v2995_v22 = vld [vmem:[%s3995_s1 + $0x10] sm:$0xff]  }
   0x8   :  { %2634 = vmatpush3.bf16.msra.mxu0 %v2979_v6  ;;  %v2988_v15 = vld [vmem:[%s3995_s1 + $0xa0] sm:$0xff]   ;;  %v2992_v19 = vld [vmem:[%s3995_s1 + $0x98] sm:$0xff]   ;;  %v2996_v23 = vld [vmem:[%s3995_s1 + $0x90] sm:$0xff]  }
   0x9   :  { %2656 = vmatpush3.bf16.msra.mxu1 %v2980_v7  ;;  %2635 = vmatprep.subr.bf16.mxu0 %v2981_v8  ;;  %v2997_v24 = vld [vmem:[%s3995_s1 + $0x48] sm:$0xff]   ;;  %v3001_v28 = vld [vmem:[%s3995_s1 + $0x40] sm:$0xff]   ;;  %v28_v33 = vld [vmem:[%s3994_s0 + $0x18] sm:$0xff] }
   0xa   :  { %2657 = vmatprep.subr.bf16.mxu1 %v2982_v9  ;;  %v2998_v25 = vld [vmem:[%s3995_s1 + $0xc8] sm:$0xff]   ;;  %v3002_v29 = vld [vmem:[%s3995_s1 + $0xc0] sm:$0xff]   ;;  %v52_v36 = vpack.c.bf16 %v28_v33, %v28_v33  ;;  %v27_v38 = vld [vmem:[%s3994_s0 + $0x10] sm:$0xff] }
   0xb   :  { %v2999_v26 = vld [vmem:[%s3995_s1 + $0x8] sm:$0xff]   ;;  %v3003_v30 = vld [vmem:[%s3995_s1] sm:$0xff]   ;;  %v51_v39 = vpack.c.bf16 %v27_v38, %v27_v38  ;;  %v3005_v40 = vld [vmem:[%s3995_s1 + $0x178] sm:$0xff]  }
   0xc   :  { %2636 = vmatpush3.bf16.msra.mxu0 %v2983_v10  ;;  %v3000_v27 = vld [vmem:[%s3995_s1 + $0x88] sm:$0xff]   ;;  %v3004_v31 = vld [vmem:[%s3995_s1 + $0x80] sm:$0xff]   ;;  %1686 = vmatprep.mubr.bf16.mxu1 %v52_v36  ;;  %v3006_v41 = vld [vmem:[%s3995_s1 + $0x1f8] sm:$0xff]  }
   0xd   :  { %2658 = vmatpush3.bf16.msra.mxu1 %v2984_v11  ;;  %2637 = vmatprep.subr.bf16.mxu0 %v2985_v12  ;;  %v26_v32 = vld [vmem:[%s3994_s0 + $0x8] sm:$0xff]  ;;  %v25_v34 = vld [vmem:[%s3994_s0] sm:$0xff]  ;;  %v3007_v42 = vld [vmem:[%s3995_s1 + $0x138] sm:$0xff]  }
   0xe   :  { %2659 = vmatprep.subr.bf16.mxu1 %v2986_v13  ;;  %v50_v35 = vpack.c.bf16 %v26_v32, %v26_v32  ;;  %v49_v37 = vpack.c.bf16 %v25_v34, %v25_v34  ;;  %v3008_v43 = vld [vmem:[%s3995_s1 + $0x1b8] sm:$0xff]   ;;  %v3009_v44 = vld [vmem:[%s3995_s1 + $0x170] sm:$0xff]   ;;  %v3013_v48 = vld [vmem:[%s3995_s1 + $0x168] sm:$0xff]  }
   0xf   :  { %v3010_v45 = vld [vmem:[%s3995_s1 + $0x1f0] sm:$0xff]   ;;  %v3014_v49 = vld [vmem:[%s3995_s1 + $0x1e8] sm:$0xff]   ;;  %v3017_v52 = vld [vmem:[%s3995_s1 + $0x160] sm:$0xff]  }
  0x10   :  { %2638 = vmatpush3.bf16.msra.mxu0 %v2987_v14  ;;  %1646 = vmatprep.mubr.bf16.mxu0 %v50_v35  ;;  %v3011_v46 = vld [vmem:[%s3995_s1 + $0x130] sm:$0xff]   ;;  %v3015_v50 = vld [vmem:[%s3995_s1 + $0x128] sm:$0xff]   ;;  %v3018_v53 = vld [vmem:[%s3995_s1 + $0x1e0] sm:$0xff]  }
  0x11   :  { %2660 = vmatpush3.bf16.msra.mxu1 %v2988_v15  ;;  %2639 = vmatprep.subr.bf16.mxu0 %v2989_v16  ;;  %v3012_v47 = vld [vmem:[%s3995_s1 + $0x1b0] sm:$0xff]   ;;  %v3016_v51 = vld [vmem:[%s3995_s1 + $0x1a8] sm:$0xff]   ;;  %v3019_v54 = vld [vmem:[%s3995_s1 + $0x120] sm:$0xff]  }
  0x12   :  { %2661 = vmatprep.subr.bf16.mxu1 %v2990_v17  ;;  %v3020_v55 = vld [vmem:[%s3995_s1 + $0x1a0] sm:$0xff]   ;;  %v3021_v56 = vld [vmem:[%s3995_s1 + $0x158] sm:$0xff]   ;;  %v3025_v60 = vld [vmem:[%s3995_s1 + $0x150] sm:$0xff]  }
  0x13   :  { %v3022_v57 = vld [vmem:[%s3995_s1 + $0x1d8] sm:$0xff]   ;;  %v3026_v61 = vld [vmem:[%s3995_s1 + $0x1d0] sm:$0xff]   ;;  %v3029_v0 = vld [vmem:[%s3995_s1 + $0x148] sm:$0xff]  }
  0x14   :  { %2640 = vmatpush3.bf16.msra.mxu0 %v2991_v18  ;;  %v3023_v58 = vld [vmem:[%s3995_s1 + $0x118] sm:$0xff]   ;;  %v3027_v62 = vld [vmem:[%s3995_s1 + $0x110] sm:$0xff]   ;;  %v3030_v1 = vld [vmem:[%s3995_s1 + $0x1c8] sm:$0xff]  }
  0x15   :  { %2662 = vmatpush3.bf16.msra.mxu1 %v2992_v19  ;;  %2641 = vmatprep.subr.bf16.mxu0 %v2993_v20  ;;  %v3024_v59 = vld [vmem:[%s3995_s1 + $0x198] sm:$0xff]   ;;  %v3028_v63 = vld [vmem:[%s3995_s1 + $0x190] sm:$0xff]   ;;  %v3031_v2 = vld [vmem:[%s3995_s1 + $0x108] sm:$0xff]  }
  0x16   :  { %2663 = vmatprep.subr.bf16.mxu1 %v2994_v21  ;;  %v3032_v3 = vld [vmem:[%s3995_s1 + $0x188] sm:$0xff]   ;;  %v3033_v4 = vld [vmem:[%s3995_s1 + $0x140] sm:$0xff]   ;;  %v32_v9 = vld [vmem:[%s3994_s0 + $0x38] sm:$0xff] }
  0x17   :  { %v3034_v5 = vld [vmem:[%s3995_s1 + $0x1c0] sm:$0xff]   ;;  %v30_v8 = vld [vmem:[%s3994_s0 + $0x28] sm:$0xff]  ;;  %v56_v11 = vpack.c.bf16 %v32_v9, %v32_v9  ;;  %v31_v13 = vld [vmem:[%s3994_s0 + $0x30] sm:$0xff] }
  0x18   :  { %2642 = vmatpush3.bf16.msra.mxu0 %v2995_v22  ;;  %v3035_v6 = vld [vmem:[%s3995_s1 + $0x100] sm:$0xff]   ;;  %v54_v10 = vpack.c.bf16 %v30_v8, %v30_v8  ;;  %v55_v15 = vpack.c.bf16 %v31_v13, %v31_v13  ;;  %v3037_v16 = vld [vmem:[%s3995_s1 + $0x278] sm:$0xff]   ;;  %v3041_v20 = vld [vmem:[%s3995_s1 + $0x270] sm:$0xff]  }
  0x19   :  { %2664 = vmatpush3.bf16.msra.mxu1 %v2996_v23  ;;  %2643 = vmatprep.subr.bf16.mxu0 %v2997_v24  ;;  %v3036_v7 = vld [vmem:[%s3995_s1 + $0x180] sm:$0xff]   ;;  %v3038_v17 = vld [vmem:[%s3995_s1 + $0x2f8] sm:$0xff]   ;;  %v3042_v21 = vld [vmem:[%s3995_s1 + $0x2f0] sm:$0xff]  }
  0x1a   :  { %2665 = vmatprep.subr.bf16.mxu1 %v2998_v25  ;;  %v29_v12 = vld [vmem:[%s3994_s0 + $0x20] sm:$0xff]  ;;  %v3039_v18 = vld [vmem:[%s3995_s1 + $0x238] sm:$0xff]   ;;  %v3043_v22 = vld [vmem:[%s3995_s1 + $0x230] sm:$0xff]  }
  0x1b   :  { %v53_v14 = vpack.c.bf16 %v29_v12, %v29_v12  ;;  %v3040_v19 = vld [vmem:[%s3995_s1 + $0x2b8] sm:$0xff]   ;;  %v3044_v23 = vld [vmem:[%s3995_s1 + $0x2b0] sm:$0xff]   ;;  %v3045_v24 = vld [vmem:[%s3995_s1 + $0x268] sm:$0xff]  }
  0x1c   :  { %2644 = vmatpush3.bf16.msra.mxu0 %v2999_v26  ;;  %v3046_v25 = vld [vmem:[%s3995_s1 + $0x2e8] sm:$0xff]   ;;  %v3053_v32 = vld [vmem:[%s3995_s1 + $0x258] sm:$0xff]   ;;  %v3057_v36 = vld [vmem:[%s3995_s1 + $0x250] sm:$0xff]  }
  0x1d   :  { %2666 = vmatpush3.bf16.msra.mxu1 %v3000_v27  ;;  %2645 = vmatprep.subr.bf16.mxu0 %v3001_v28  ;;  %v3047_v26 = vld [vmem:[%s3995_s1 + $0x228] sm:$0xff]   ;;  %v3049_v28 = vld [vmem:[%s3995_s1 + $0x260] sm:$0xff]   ;;  %v3054_v33 = vld [vmem:[%s3995_s1 + $0x2d8] sm:$0xff]  }
  0x1e   :  { %2667 = vmatprep.subr.bf16.mxu1 %v3002_v29  ;;  %v3048_v27 = vld [vmem:[%s3995_s1 + $0x2a8] sm:$0xff]   ;;  %v3050_v29 = vld [vmem:[%s3995_s1 + $0x2e0] sm:$0xff]   ;;  %v3055_v34 = vld [vmem:[%s3995_s1 + $0x218] sm:$0xff]  }
  0x1f   :  { %v3056_v35 = vld [vmem:[%s3995_s1 + $0x298] sm:$0xff]   ;;  %v3059_v38 = vld [vmem:[%s3995_s1 + $0x210] sm:$0xff]  }
  0x20   :  { %2646 = vmatpush3.bf16.msra.mxu0 %v3003_v30  ;;  %v3051_v30 = vld [vmem:[%s3995_s1 + $0x220] sm:$0xff]   ;;  %v3085_v8 = vld [vmem:[%s3995_s1 + $0x358] sm:$0xff]   ;;  %v3089_v12 = vld [vmem:[%s3995_s1 + $0x350] sm:$0xff]  }
  0x21   :  { %2668 = vmatpush3.bf16.msra.mxu1 %v3004_v31  ;;  %2675 = vmatprep.subr.bf16.mxu0 %v3005_v40  ;;  %v3052_v31 = vld [vmem:[%s3995_s1 + $0x2a0] sm:$0xff]   ;;  %v3061_v40 = vld [vmem:[%s3995_s1 + $0x248] sm:$0xff]   ;;  %v3086_v9 = vld [vmem:[%s3995_s1 + $0x3d8] sm:$0xff]  }
  0x22   :  { %2697 = vmatprep.subr.bf16.mxu1 %v3006_v41  ;;  %v3062_v41 = vld [vmem:[%s3995_s1 + $0x2c8] sm:$0xff]   ;;  %v3090_v13 = vld [vmem:[%s3995_s1 + $0x3d0] sm:$0xff]  }
  0x23   :  { %1647 = vmatmul.mubr.bf16.vlgmr.msra.gmra.mxu0 %v49_v37  ;;  %v3058_v37 = vld [vmem:[%s3995_s1 + $0x2d0] sm:$0xff]  }
  0x24   :  { %1687 = vmatmul.mubr.bf16.vlgmr.msra.gmra.mxu1 %v51_v39  ;;  %2676 = vmatpush3.bf16.msra.mxu0 %v3007_v42  ;;  %v3060_v39 = vld [vmem:[%s3995_s1 + $0x290] sm:$0xff]   ;;  %v3063_v42 = vld [vmem:[%s3995_s1 + $0x208] sm:$0xff]  }
  0x25   :  { %2698 = vmatpush3.bf16.msra.mxu1 %v3008_v43  ;;  %2677 = vmatprep.subr.bf16.mxu0 %v3009_v44  ;;  %v3064_v43 = vld [vmem:[%s3995_s1 + $0x288] sm:$0xff]   ;;  %v3065_v44 = vld [vmem:[%s3995_s1 + $0x240] sm:$0xff]  }
  0x26   :  { %2699 = vmatprep.subr.bf16.mxu1 %v3010_v45  ;;  %1726 = vmatprep.mubr.bf16.mxu0 %v54_v10  ;;  %v3066_v45 = vld [vmem:[%s3995_s1 + $0x2c0] sm:$0xff]   ;;  %v3087_v10 = vld [vmem:[%s3995_s1 + $0x318] sm:$0xff]  }
  0x27   :  { %1766 = vmatprep.mubr.bf16.mxu1 %v56_v11  ;;  %v3088_v11 = vld [vmem:[%s3995_s1 + $0x398] sm:$0xff]  }
  0x28   :  { %2678 = vmatpush3.bf16.msra.mxu0 %v3011_v46  ;;  %v3067_v46 = vld [vmem:[%s3995_s1 + $0x200] sm:$0xff]  }
  0x29   :  { %2700 = vmatpush3.bf16.msra.mxu1 %v3012_v47  ;;  %2679 = vmatprep.subr.bf16.mxu0 %v3013_v48  ;;  %v3068_v47 = vld [vmem:[%s3995_s1 + $0x280] sm:$0xff]   ;;  %v34_v48 = vld [vmem:[%s3994_s0 + $0x48] sm:$0xff] }
  0x2a   :  { %2701 = vmatprep.subr.bf16.mxu1 %v3014_v49  ;;  %v58_v49 = vpack.c.bf16 %v34_v48, %v34_v48  ;;  %v3117_v48 = vld [vmem:[%s3995_s1 + $0x458] sm:$0xff]  }
  0x2c   :  { %2680 = vmatpush3.bf16.msra.mxu0 %v3015_v50  ;;  %v36_v50 = vld [vmem:[%s3994_s0 + $0x58] sm:$0xff] }
  0x2d   :  { %2702 = vmatpush3.bf16.msra.mxu1 %v3016_v51  ;;  %2681 = vmatprep.subr.bf16.mxu0 %v3017_v52  ;;  %v33_v51 = vld [vmem:[%s3994_s0 + $0x40] sm:$0xff]  ;;  %v35_v52 = vld [vmem:[%s3994_s0 + $0x50] sm:$0xff] }
  0x2e   :  { %2703 = vmatprep.subr.bf16.mxu1 %v3018_v53  ;;  %v60_v53 = vpack.c.bf16 %v36_v50, %v36_v50  ;;  %v3119_v50 = vld [vmem:[%s3995_s1 + $0x418] sm:$0xff]  }
  0x30   :  { %2682 = vmatpush3.bf16.msra.mxu0 %v3019_v54  ;;  %v57_v54 = vpack.c.bf16 %v33_v51, %v33_v51  ;;  %v3120_v51 = vld [vmem:[%s3995_s1 + $0x498] sm:$0xff]  }
  0x31   :  { %2704 = vmatpush3.bf16.msra.mxu1 %v3020_v55  ;;  %2683 = vmatprep.subr.bf16.mxu0 %v3021_v56  ;;  %v59_v55 = vpack.c.bf16 %v35_v52, %v35_v52  ;;  %v3069_v56 = vld [vmem:[%s3995_s1 + $0x378] sm:$0xff]   ;;  %v3121_v52 = vld [vmem:[%s3995_s1 + $0x450] sm:$0xff]  }
  0x32   :  { %2705 = vmatprep.subr.bf16.mxu1 %v3022_v57  ;;  %v3070_v57 = vld [vmem:[%s3995_s1 + $0x3f8] sm:$0xff]  }
  0x34   :  { %2684 = vmatpush3.bf16.msra.mxu0 %v3023_v58  ;;  %v3071_v58 = vld [vmem:[%s3995_s1 + $0x338] sm:$0xff]  }
  0x35   :  { %2706 = vmatpush3.bf16.msra.mxu1 %v3024_v59  ;;  %2685 = vmatprep.subr.bf16.mxu0 %v3025_v60  ;;  %v3072_v59 = vld [vmem:[%s3995_s1 + $0x3b8] sm:$0xff]   ;;  %v3073_v60 = vld [vmem:[%s3995_s1 + $0x370] sm:$0xff]  }
  0x36   :  { %2707 = vmatprep.subr.bf16.mxu1 %v3026_v61  ;;  %v3074_v61 = vld [vmem:[%s3995_s1 + $0x3f0] sm:$0xff]  }
  0x38   :  { %2686 = vmatpush3.bf16.msra.mxu0 %v3027_v62  ;;  %v3075_v62 = vld [vmem:[%s3995_s1 + $0x330] sm:$0xff]  }
  0x39   :  { %2708 = vmatpush3.bf16.msra.mxu1 %v3028_v63  ;;  %2687 = vmatprep.subr.bf16.mxu0 %v3029_v0  ;;  %v3076_v63 = vld [vmem:[%s3995_s1 + $0x3b0] sm:$0xff]   ;;  %v3077_v0 = vld [vmem:[%s3995_s1 + $0x368] sm:$0xff]  }
  0x3a   :  { %2709 = vmatprep.subr.bf16.mxu1 %v3030_v1  ;;  %v3078_v1 = vld [vmem:[%s3995_s1 + $0x3e8] sm:$0xff]  }
  0x3c   :  { %2688 = vmatpush3.bf16.msra.mxu0 %v3031_v2  ;;  %v3079_v2 = vld [vmem:[%s3995_s1 + $0x328] sm:$0xff]  }
  0x3d   :  { %2710 = vmatpush3.bf16.msra.mxu1 %v3032_v3  ;;  %2689 = vmatprep.subr.bf16.mxu0 %v3033_v4  ;;  %v3080_v3 = vld [vmem:[%s3995_s1 + $0x3a8] sm:$0xff]   ;;  %v3081_v4 = vld [vmem:[%s3995_s1 + $0x360] sm:$0xff]  }
  0x3e   :  { %2711 = vmatprep.subr.bf16.mxu1 %v3034_v5  ;;  %v3082_v5 = vld [vmem:[%s3995_s1 + $0x3e0] sm:$0xff]  }
  0x40   :  { %2690 = vmatpush3.bf16.msra.mxu0 %v3035_v6  ;;  %v3083_v6 = vld [vmem:[%s3995_s1 + $0x320] sm:$0xff]  }
  0x41   :  { %2712 = vmatpush3.bf16.msra.mxu1 %v3036_v7  ;;  %2719 = vmatprep.subr.bf16.mxu0 %v3037_v16  ;;  %v3084_v7 = vld [vmem:[%s3995_s1 + $0x3a0] sm:$0xff]   ;;  %v3093_v16 = vld [vmem:[%s3995_s1 + $0x348] sm:$0xff]  }
  0x42   :  { %2741 = vmatprep.subr.bf16.mxu1 %v3038_v17  ;;  %v3094_v17 = vld [vmem:[%s3995_s1 + $0x3c8] sm:$0xff]  }
  0x43   :  { %1727 = vmatmul.mubr.bf16.vlgmr.msra.gmra.mxu0 %v53_v14  ;;  %v3091_v14 = vld [vmem:[%s3995_s1 + $0x310] sm:$0xff]  }
  0x44   :  { %1767 = vmatmul.mubr.bf16.vlgmr.msra.gmra.mxu1 %v55_v15  ;;  %2720 = vmatpush3.bf16.msra.mxu0 %v3039_v18  ;;  %v3092_v15 = vld [vmem:[%s3995_s1 + $0x390] sm:$0xff]   ;;  %v3095_v18 = vld [vmem:[%s3995_s1 + $0x308] sm:$0xff]  }
  0x45   :  { %2742 = vmatpush3.bf16.msra.mxu1 %v3040_v19  ;;  %2721 = vmatprep.subr.bf16.mxu0 %v3041_v20  ;;  %v3096_v19 = vld [vmem:[%s3995_s1 + $0x388] sm:$0xff]   ;;  %v3097_v20 = vld [vmem:[%s3995_s1 + $0x340] sm:$0xff]  }
  0x46   :  { %2743 = vmatprep.subr.bf16.mxu1 %v3042_v21  ;;  %1806 = vmatprep.mubr.bf16.mxu0 %v58_v49  ;;  %v3098_v21 = vld [vmem:[%s3995_s1 + $0x3c0] sm:$0xff]   ;;  %v3118_v49 = vld [vmem:[%s3995_s1 + $0x4d8] sm:$0xff]  }
  0x47   :  { %1846 = vmatprep.mubr.bf16.mxu1 %v60_v53  ;;  %v3122_v53 = vld [vmem:[%s3995_s1 + $0x4d0] sm:$0xff]  }
  0x48   :  { %2722 = vmatpush3.bf16.msra.mxu0 %v3043_v22  ;;  %v3099_v22 = vld [vmem:[%s3995_s1 + $0x300] sm:$0xff]  }
  0x49   :  { %2744 = vmatpush3.bf16.msra.mxu1 %v3044_v23  ;;  %2723 = vmatprep.subr.bf16.mxu0 %v3045_v24  ;;  %v3100_v23 = vld [vmem:[%s3995_s1 + $0x380] sm:$0xff]   ;;  %v38_v24 = vld [vmem:[%s3994_s0 + $0x68] sm:$0xff] }
  0x4a   :  { %2745 = vmatprep.subr.bf16.mxu1 %v3046_v25  ;;  %v40_v25 = vld [vmem:[%s3994_s0 + $0x78] sm:$0xff] }
  0x4c   :  { %2724 = vmatpush3.bf16.msra.mxu0 %v3047_v26  ;;  %v37_v26 = vld [vmem:[%s3994_s0 + $0x60] sm:$0xff] }
  0x4d   :  { %2746 = vmatpush3.bf16.msra.mxu1 %v3048_v27  ;;  %2725 = vmatprep.subr.bf16.mxu0 %v3049_v28  ;;  %v62_v27 = vpack.c.bf16 %v38_v24, %v38_v24  ;;  %v64_v28 = vpack.c.bf16 %v40_v25, %v40_v25  ;;  %v3149_v24 = vld [vmem:[%s3995_s1 + $0x558] sm:$0xff]  }
  0x4e   :  { %2747 = vmatprep.subr.bf16.mxu1 %v3050_v29  ;;  %v61_v29 = vpack.c.bf16 %v37_v26, %v37_v26  ;;  %v3150_v25 = vld [vmem:[%s3995_s1 + $0x5d8] sm:$0xff]  }
  0x4f   :  { %v3151_v26 = vld [vmem:[%s3995_s1 + $0x518] sm:$0xff]  }
  0x50   :  { %2726 = vmatpush3.bf16.msra.mxu0 %v3051_v30  ;;  %v39_v30 = vld [vmem:[%s3994_s0 + $0x70] sm:$0xff] }
  0x51   :  { %2748 = vmatpush3.bf16.msra.mxu1 %v3052_v31  ;;  %2727 = vmatprep.subr.bf16.mxu0 %v3053_v32  ;;  %v63_v31 = vpack.c.bf16 %v39_v30, %v39_v30  ;;  %v3101_v32 = vld [vmem:[%s3995_s1 + $0x478] sm:$0xff]   ;;  %v3155_v30 = vld [vmem:[%s3995_s1 + $0x510] sm:$0xff]  }
  0x52   :  { %2749 = vmatprep.subr.bf16.mxu1 %v3054_v33  ;;  %v3102_v33 = vld [vmem:[%s3995_s1 + $0x4f8] sm:$0xff]  }
  0x54   :  { %2728 = vmatpush3.bf16.msra.mxu0 %v3055_v34  ;;  %v3103_v34 = vld [vmem:[%s3995_s1 + $0x438] sm:$0xff]  }
  0x55   :  { %2750 = vmatpush3.bf16.msra.mxu1 %v3056_v35  ;;  %2729 = vmatprep.subr.bf16.mxu0 %v3057_v36  ;;  %v3104_v35 = vld [vmem:[%s3995_s1 + $0x4b8] sm:$0xff]   ;;  %v3105_v36 = vld [vmem:[%s3995_s1 + $0x470] sm:$0xff]  }
  0x56   :  { %2751 = vmatprep.subr.bf16.mxu1 %v3058_v37  ;;  %v3106_v37 = vld [vmem:[%s3995_s1 + $0x4f0] sm:$0xff]  }
  0x58   :  { %2730 = vmatpush3.bf16.msra.mxu0 %v3059_v38  ;;  %v3107_v38 = vld [vmem:[%s3995_s1 + $0x430] sm:$0xff]  }
  0x59   :  { %2752 = vmatpush3.bf16.msra.mxu1 %v3060_v39  ;;  %2731 = vmatprep.subr.bf16.mxu0 %v3061_v40  ;;  %v3108_v39 = vld [vmem:[%s3995_s1 + $0x4b0] sm:$0xff]   ;;  %v3109_v40 = vld [vmem:[%s3995_s1 + $0x468] sm:$0xff]  }
  0x5a   :  { %2753 = vmatprep.subr.bf16.mxu1 %v3062_v41  ;;  %v3110_v41 = vld [vmem:[%s3995_s1 + $0x4e8] sm:$0xff]  }
  0x5c   :  { %2732 = vmatpush3.bf16.msra.mxu0 %v3063_v42  ;;  %v3111_v42 = vld [vmem:[%s3995_s1 + $0x428] sm:$0xff]  }
  0x5d   :  { %2754 = vmatpush3.bf16.msra.mxu1 %v3064_v43  ;;  %2733 = vmatprep.subr.bf16.mxu0 %v3065_v44  ;;  %v3112_v43 = vld [vmem:[%s3995_s1 + $0x4a8] sm:$0xff]   ;;  %v3113_v44 = vld [vmem:[%s3995_s1 + $0x460] sm:$0xff]  }
  0x5e   :  { %2755 = vmatprep.subr.bf16.mxu1 %v3066_v45  ;;  %v3114_v45 = vld [vmem:[%s3995_s1 + $0x4e0] sm:$0xff]  }
  0x60   :  { %2734 = vmatpush3.bf16.msra.mxu0 %v3067_v46  ;;  %v3115_v46 = vld [vmem:[%s3995_s1 + $0x420] sm:$0xff]  }
  0x61   :  { %2756 = vmatpush3.bf16.msra.mxu1 %v3068_v47  ;;  %2763 = vmatprep.subr.bf16.mxu0 %v3069_v56  ;;  %v3116_v47 = vld [vmem:[%s3995_s1 + $0x4a0] sm:$0xff]   ;;  %v3125_v56 = vld [vmem:[%s3995_s1 + $0x448] sm:$0xff]  }
  0x62   :  { %2785 = vmatprep.subr.bf16.mxu1 %v3070_v57  ;;  %v3126_v57 = vld [vmem:[%s3995_s1 + $0x4c8] sm:$0xff]  }
  0x63   :  { %1807 = vmatmul.mubr.bf16.vlgmr.msra.gmra.mxu0 %v57_v54  ;;  %v3123_v54 = vld [vmem:[%s3995_s1 + $0x410] sm:$0xff]  }
  0x64   :  { %1847 = vmatmul.mubr.bf16.vlgmr.msra.gmra.mxu1 %v59_v55  ;;  %2764 = vmatpush3.bf16.msra.mxu0 %v3071_v58  ;;  %v3124_v55 = vld [vmem:[%s3995_s1 + $0x490] sm:$0xff]   ;;  %v3127_v58 = vld [vmem:[%s3995_s1 + $0x408] sm:$0xff]  }
  0x65   :  { %2786 = vmatpush3.bf16.msra.mxu1 %v3072_v59  ;;  %2765 = vmatprep.subr.bf16.mxu0 %v3073_v60  ;;  %v3128_v59 = vld [vmem:[%s3995_s1 + $0x488] sm:$0xff]   ;;  %v3129_v60 = vld [vmem:[%s3995_s1 + $0x440] sm:$0xff]  }
  0x66   :  { %2787 = vmatprep.subr.bf16.mxu1 %v3074_v61  ;;  %1886 = vmatprep.mubr.bf16.mxu0 %v62_v27  ;;  %v3130_v61 = vld [vmem:[%s3995_s1 + $0x4c0] sm:$0xff]   ;;  %v3152_v27 = vld [vmem:[%s3995_s1 + $0x598] sm:$0xff]  }
  0x67   :  { %1926 = vmatprep.mubr.bf16.mxu1 %v64_v28  ;;  %v3153_v28 = vld [vmem:[%s3995_s1 + $0x550] sm:$0xff]  }
  0x68   :  { %2766 = vmatpush3.bf16.msra.mxu0 %v3075_v62  ;;  %v3131_v62 = vld [vmem:[%s3995_s1 + $0x400] sm:$0xff]  }
  0x69   :  { %2788 = vmatpush3.bf16.msra.mxu1 %v3076_v63  ;;  %2767 = vmatprep.subr.bf16.mxu0 %v3077_v0  ;;  %v3132_v63 = vld [vmem:[%s3995_s1 + $0x480] sm:$0xff]   ;;  %v42_v0 = vld [vmem:[%s3994_s0 + $0x88] sm:$0xff] }
  0x6a   :  { %2789 = vmatprep.subr.bf16.mxu1 %v3078_v1  ;;  %v44_v1 = vld [vmem:[%s3994_s0 + $0x98] sm:$0xff] }
  0x6c   :  { %2768 = vmatpush3.bf16.msra.mxu0 %v3079_v2  ;;  %v66_v2 = vpack.c.bf16 %v42_v0, %v42_v0 }
  0x6d   :  { %2790 = vmatpush3.bf16.msra.mxu1 %v3080_v3  ;;  %2769 = vmatprep.subr.bf16.mxu0 %v3081_v4  ;;  %v68_v3 = vpack.c.bf16 %v44_v1, %v44_v1  ;;  %v41_v4 = vld [vmem:[%s3994_s0 + $0x80] sm:$0xff] }
  0x6e   :  { %2791 = vmatprep.subr.bf16.mxu1 %v3082_v5  ;;  %v43_v5 = vld [vmem:[%s3994_s0 + $0x90] sm:$0xff] }
  0x70   :  { %2770 = vmatpush3.bf16.msra.mxu0 %v3083_v6  ;;  %v65_v6 = vpack.c.bf16 %v41_v4, %v41_v4 }
  0x71   :  { %2792 = vmatpush3.bf16.msra.mxu1 %v3084_v7  ;;  %2771 = vmatprep.subr.bf16.mxu0 %v3085_v8  ;;  %v67_v7 = vpack.c.bf16 %v43_v5, %v43_v5  ;;  %v3133_v8 = vld [vmem:[%s3995_s1 + $0x578] sm:$0xff]  }
  0x72   :  { %2793 = vmatprep.subr.bf16.mxu1 %v3086_v9  ;;  %v3134_v9 = vld [vmem:[%s3995_s1 + $0x5f8] sm:$0xff]  }
  0x74   :  { %2772 = vmatpush3.bf16.msra.mxu0 %v3087_v10  ;;  %v3135_v10 = vld [vmem:[%s3995_s1 + $0x538] sm:$0xff]  }
  0x75   :  { %2794 = vmatpush3.bf16.msra.mxu1 %v3088_v11  ;;  %2773 = vmatprep.subr.bf16.mxu0 %v3089_v12  ;;  %v3136_v11 = vld [vmem:[%s3995_s1 + $0x5b8] sm:$0xff]   ;;  %v3137_v12 = vld [vmem:[%s3995_s1 + $0x570] sm:$0xff]  }
  0x76   :  { %2795 = vmatprep.subr.bf16.mxu1 %v3090_v13  ;;  %v3138_v13 = vld [vmem:[%s3995_s1 + $0x5f0] sm:$0xff]  }
  0x78   :  { %2774 = vmatpush3.bf16.msra.mxu0 %v3091_v14  ;;  %v3139_v14 = vld [vmem:[%s3995_s1 + $0x530] sm:$0xff]  }
  0x79   :  { %2796 = vmatpush3.bf16.msra.mxu1 %v3092_v15  ;;  %2775 = vmatprep.subr.bf16.mxu0 %v3093_v16  ;;  %v3140_v15 = vld [vmem:[%s3995_s1 + $0x5b0] sm:$0xff]   ;;  %v3141_v16 = vld [vmem:[%s3995_s1 + $0x568] sm:$0xff]  }
  0x7a   :  { %2797 = vmatprep.subr.bf16.mxu1 %v3094_v17  ;;  %v3142_v17 = vld [vmem:[%s3995_s1 + $0x5e8] sm:$0xff]  }
  0x7c   :  { %2776 = vmatpush3.bf16.msra.mxu0 %v3095_v18  ;;  %v3143_v18 = vld [vmem:[%s3995_s1 + $0x528] sm:$0xff]  }
  0x7d   :  { %2798 = vmatpush3.bf16.msra.mxu1 %v3096_v19  ;;  %2777 = vmatprep.subr.bf16.mxu0 %v3097_v20  ;;  %v3144_v19 = vld [vmem:[%s3995_s1 + $0x5a8] sm:$0xff]   ;;  %v3145_v20 = vld [vmem:[%s3995_s1 + $0x560] sm:$0xff]  }
  0x7e   :  { %2799 = vmatprep.subr.bf16.mxu1 %v3098_v21  ;;  %v3146_v21 = vld [vmem:[%s3995_s1 + $0x5e0] sm:$0xff]  }
  0x80   :  { %2778 = vmatpush3.bf16.msra.mxu0 %v3099_v22  ;;  %v3147_v22 = vld [vmem:[%s3995_s1 + $0x520] sm:$0xff]  }
  0x81   :  { %2800 = vmatpush3.bf16.msra.mxu1 %v3100_v23  ;;  %2807 = vmatprep.subr.bf16.mxu0 %v3101_v32  ;;  %v3148_v23 = vld [vmem:[%s3995_s1 + $0x5a0] sm:$0xff]   ;;  %v3157_v32 = vld [vmem:[%s3995_s1 + $0x548] sm:$0xff]  }
  0x82   :  { %2829 = vmatprep.subr.bf16.mxu1 %v3102_v33  ;;  %v3158_v33 = vld [vmem:[%s3995_s1 + $0x5c8] sm:$0xff]  }
  0x83   :  { %1887 = vmatmul.mubr.bf16.vlgmr.msra.gmra.mxu0 %v61_v29  ;;  %v3154_v29 = vld [vmem:[%s3995_s1 + $0x5d0] sm:$0xff]  }
  0x84   :  { %1927 = vmatmul.mubr.bf16.vlgmr.msra.gmra.mxu1 %v63_v31  ;;  %2808 = vmatpush3.bf16.msra.mxu0 %v3103_v34  ;;  %v3156_v31 = vld [vmem:[%s3995_s1 + $0x590] sm:$0xff]   ;;  %v3159_v34 = vld [vmem:[%s3995_s1 + $0x508] sm:$0xff]  }
  0x85   :  { %2830 = vmatpush3.bf16.msra.mxu1 %v3104_v35  ;;  %2809 = vmatprep.subr.bf16.mxu0 %v3105_v36  ;;  %v3160_v35 = vld [vmem:[%s3995_s1 + $0x588] sm:$0xff]   ;;  %v3161_v36 = vld [vmem:[%s3995_s1 + $0x540] sm:$0xff]  }
  0x86   :  { %2831 = vmatprep.subr.bf16.mxu1 %v3106_v37  ;;  %1966 = vmatprep.mubr.bf16.mxu0 %v66_v2  ;;  %v3162_v37 = vld [vmem:[%s3995_s1 + $0x5c0] sm:$0xff]  }
  0x87   :  { %2006 = vmatprep.mubr.bf16.mxu1 %v68_v3 }
  0x88   :  { %2810 = vmatpush3.bf16.msra.mxu0 %v3107_v38  ;;  %v3163_v38 = vld [vmem:[%s3995_s1 + $0x500] sm:$0xff]  }
  0x89   :  { %2832 = vmatpush3.bf16.msra.mxu1 %v3108_v39  ;;  %2811 = vmatprep.subr.bf16.mxu0 %v3109_v40  ;;  %v3164_v39 = vld [vmem:[%s3995_s1 + $0x580] sm:$0xff]   ;;  %v46_v40 = vld [vmem:[%s3994_s0 + $0xa8] sm:$0xff] }
  0x8a   :  { %2833 = vmatprep.subr.bf16.mxu1 %v3110_v41  ;;  %v70_v41 = vpack.c.bf16 %v46_v40, %v46_v40 }
  0x8c   :  { %2812 = vmatpush3.bf16.msra.mxu0 %v3111_v42  ;;  %v48_v42 = vld [vmem:[%s3994_s0 + $0xb8] sm:$0xff] }
  0x8d   :  { %2834 = vmatpush3.bf16.msra.mxu1 %v3112_v43  ;;  %2813 = vmatprep.subr.bf16.mxu0 %v3113_v44  ;;  %v45_v43 = vld [vmem:[%s3994_s0 + $0xa0] sm:$0xff]  ;;  %v47_v44 = vld [vmem:[%s3994_s0 + $0xb0] sm:$0xff] }
  0x8e   :  { %2835 = vmatprep.subr.bf16.mxu1 %v3114_v45  ;;  %v72_v45 = vpack.c.bf16 %v48_v42, %v48_v42 }
  0x90   :  { %2814 = vmatpush3.bf16.msra.mxu0 %v3115_v46  ;;  %v69_v46 = vpack.c.bf16 %v45_v43, %v45_v43 }
  0x91   :  { %2836 = vmatpush3.bf16.msra.mxu1 %v3116_v47  ;;  %2815 = vmatprep.subr.bf16.mxu0 %v3117_v48  ;;  %v71_v47 = vpack.c.bf16 %v47_v44, %v47_v44 }
  0x92   :  { %2837 = vmatprep.subr.bf16.mxu1 %v3118_v49 }
  0x94   :  { %2816 = vmatpush3.bf16.msra.mxu0 %v3119_v50 }
  0x95   :  { %2838 = vmatpush3.bf16.msra.mxu1 %v3120_v51  ;;  %2817 = vmatprep.subr.bf16.mxu0 %v3121_v52 }
  0x96   :  { %2839 = vmatprep.subr.bf16.mxu1 %v3122_v53 }
  0x98   :  { %2818 = vmatpush3.bf16.msra.mxu0 %v3123_v54 }
  0x99   :  { %2840 = vmatpush3.bf16.msra.mxu1 %v3124_v55  ;;  %2819 = vmatprep.subr.bf16.mxu0 %v3125_v56 }
  0x9a   :  { %2841 = vmatprep.subr.bf16.mxu1 %v3126_v57 }
  0x9c   :  { %2820 = vmatpush3.bf16.msra.mxu0 %v3127_v58 }
  0x9d   :  { %2842 = vmatpush3.bf16.msra.mxu1 %v3128_v59  ;;  %2821 = vmatprep.subr.bf16.mxu0 %v3129_v60 }
  0x9e   :  { %2843 = vmatprep.subr.bf16.mxu1 %v3130_v61 }
  0xa0   :  { %2822 = vmatpush3.bf16.msra.mxu0 %v3131_v62 }
  0xa1   :  { %2844 = vmatpush3.bf16.msra.mxu1 %v3132_v63  ;;  %2851 = vmatprep.subr.bf16.mxu0 %v3133_v8 }
  0xa2   :  { %2873 = vmatprep.subr.bf16.mxu1 %v3134_v9 }
  0xa3   :  { %1967 = vmatmul.mubr.bf16.vlgmr.msra.gmra.mxu0 %v65_v6 }
  0xa4   :  { %2007 = vmatmul.mubr.bf16.vlgmr.msra.gmra.mxu1 %v67_v7  ;;  %2852 = vmatpush3.bf16.msra.mxu0 %v3135_v10 }
  0xa5   :  { %2874 = vmatpush3.bf16.msra.mxu1 %v3136_v11  ;;  %2853 = vmatprep.subr.bf16.mxu0 %v3137_v12 }
  0xa6   :  { %2875 = vmatprep.subr.bf16.mxu1 %v3138_v13  ;;  %2046 = vmatprep.mubr.bf16.mxu0 %v70_v41 }
  0xa7   :  { %2086 = vmatprep.mubr.bf16.mxu1 %v72_v45 }
  0xa8   :  { %2854 = vmatpush3.bf16.msra.mxu0 %v3139_v14 }
  0xa9   :  { %2876 = vmatpush3.bf16.msra.mxu1 %v3140_v15  ;;  %2855 = vmatprep.subr.bf16.mxu0 %v3141_v16 }
  0xaa   :  { %2877 = vmatprep.subr.bf16.mxu1 %v3142_v17 }
  0xac   :  { %2856 = vmatpush3.bf16.msra.mxu0 %v3143_v18 }
  0xad   :  { %2878 = vmatpush3.bf16.msra.mxu1 %v3144_v19  ;;  %2857 = vmatprep.subr.bf16.mxu0 %v3145_v20 }
  0xae   :  { %2879 = vmatprep.subr.bf16.mxu1 %v3146_v21 }
  0xb0   :  { %2858 = vmatpush3.bf16.msra.mxu0 %v3147_v22 }
  0xb1   :  { %2880 = vmatpush3.bf16.msra.mxu1 %v3148_v23  ;;  %2859 = vmatprep.subr.bf16.mxu0 %v3149_v24 }
  0xb2   :  { %2881 = vmatprep.subr.bf16.mxu1 %v3150_v25 }
  0xb4   :  { %2860 = vmatpush3.bf16.msra.mxu0 %v3151_v26 }
  0xb5   :  { %2882 = vmatpush3.bf16.msra.mxu1 %v3152_v27  ;;  %2861 = vmatprep.subr.bf16.mxu0 %v3153_v28 }
  0xb6   :  { %2883 = vmatprep.subr.bf16.mxu1 %v3154_v29 }
  0xb8   :  { %2862 = vmatpush3.bf16.msra.mxu0 %v3155_v30 }
  0xb9   :  { %2884 = vmatpush3.bf16.msra.mxu1 %v3156_v31  ;;  %2863 = vmatprep.subr.bf16.mxu0 %v3157_v32 }
  0xba   :  { %2885 = vmatprep.subr.bf16.mxu1 %v3158_v33 }
  0xbc   :  { %2864 = vmatpush3.bf16.msra.mxu0 %v3159_v34 }
  0xbd   :  { %2886 = vmatpush3.bf16.msra.mxu1 %v3160_v35  ;;  %2865 = vmatprep.subr.bf16.mxu0 %v3161_v36 }
  0xbe   :  { %2887 = vmatprep.subr.bf16.mxu1 %v3162_v37 }
  0xc0   :  { %2866 = vmatpush3.bf16.msra.mxu0 %v3163_v38 }
  0xc1   :  { %2888 = vmatpush3.bf16.msra.mxu1 %v3164_v39 }
  0xc3   :  { %2047 = vmatmul.mubr.bf16.vlgmr.msra.gmra.mxu0 %v69_v46 }
  0xc4   :  { %2087 = vmatmul.mubr.bf16.vlgmr.msra.gmra.mxu1 %v71_v47 }
  0xc5   :  { %11 = vsyncpa [#allocation3], 0  ;;  %v2414_v50 = vld [vmem:[%s3999_s5] ss:$0 sm:$0xff]  ;;  %v3165_v61 = vld [vmem:[%s3996_s2 + $0x18] sm:$0xff]   ;;  %v3207_v62 = vmov 0.0  }
  0xc6   :  { %2918 = vmatprep.subr.bf16.mxu0 %v3207_v62  ;;  %2930 = vmatprep.subr.bf16.mxu1 %v3207_v62  ;;  %v3166_v9 = vld [vmem:[%s3996_s2 + $0x10] sm:$0xff]   ;;  %v3167_v12 = vld [vmem:[%s3996_s2 + $0x8] sm:$0xff]   ;;  %v3168_v13 = vld [vmem:[%s3996_s2] sm:$0xff]   ;;  %vm3208_vm0 = vmmov 0   ;;  %vm2133_vm1 = vcmask 523264   ;;  %s3209_s14 = smov [#allocation2]  }
  0xc7   :  { %2919 = vmatpush3.bf16.msra.mxu0 %v3165_v61  ;;  %2926 = vmatprep.mubr.msk.bf16.mxu0 %vm3208_vm0, %v3207_v62  ;;  %v3169_v14 = vld [vmem:[%s3997_s3 + $0x38] sm:$0xff]   ;;  %v3170_v15 = vld [vmem:[%s3997_s3 + $0x30] sm:$0xff]   ;;  %v3171_v16 = vld [vmem:[%s3997_s3 + $0x28] sm:$0xff]   ;;  %s2406_s15 = sshll.u32 %s3209_s14, 4  ;;  %s2407_s15 = int_to_ptr.vmem [resolvable:$true] %s2406_s15 }
  0xc8   :  { %2920 = vmatprep.subr.bf16.mxu0 %v3207_v62  ;;  %2946 = vmatprep.mubr.msk.bf16.mxu1 %vm3208_vm0, %v3207_v62  ;;  %v3172_v17 = vld [vmem:[%s3997_s3 + $0x20] sm:$0xff]   ;;  %v3173_v18 = vld [vmem:[%s3997_s3 + $0x18] sm:$0xff]   ;;  %v3174_v24 = vld [vmem:[%s3997_s3 + $0x10] sm:$0xff]   ;;  %p3190_p1 = scmp.lt.s32.totalorder %s2407_s15, %s2407_s15 }
  0xc9   :  { %2931 = vmatpush3.bf16.msra.mxu1 %v3169_v14  ;;  %v3182_v14 = vld [vmem:[%s3998_s4 + $0x10] sm:$0xff]  }
  0xca   :  { %2932 = vmatprep.subr.bf16.mxu1 %v3207_v62 }
  0xcb   :  { %2921 = vmatpush3.bf16.msra.mxu0 %v3166_v9  ;;  %v3177_v9 = vld [vmem:[%s3998_s4 + $0x38] sm:$0xff]  }
  0xcc   :  { %2922 = vmatprep.subr.bf16.mxu0 %v3207_v62 }
  0xcd   :  { %2933 = vmatpush3.bf16.msra.mxu1 %v3170_v15  ;;  %v2607_v15 = vld [vmem:[%s3999_s5 + $0x1] ss:$0 sm:$0xff] }
  0xce   :  { %2934 = vmatprep.subr.bf16.mxu1 %v3207_v62 }
  0xcf   :  { %2923 = vmatpush3.bf16.msra.mxu0 %v3167_v12  ;;  %v3180_v12 = vld [vmem:[%s3998_s4 + $0x20] sm:$0xff]  }
  0xd0   :  { %2924 = vmatprep.subr.bf16.mxu0 %v3207_v62 }
  0xd1   :  { %2935 = vmatpush3.bf16.msra.mxu1 %v3171_v16 }
  0xd2   :  { %2936 = vmatprep.subr.bf16.mxu1 %v3207_v62 }
  0xd3   :  { %2925 = vmatpush3.bf16.msra.mxu0 %v3168_v13  ;;  %v3181_v13 = vld [vmem:[%s3998_s4 + $0x18] sm:$0xff]  }
  0xd4   :  { %2950 = vmatprep.subr.bf16.mxu0 %v3207_v62 }
  0xd5   :  { %2937 = vmatpush3.bf16.msra.mxu1 %v3172_v17 }
  0xd6   :  { %2938 = vmatprep.subr.bf16.mxu1 %v3207_v62 }
  0xd9   :  { %2939 = vmatpush3.bf16.msra.mxu1 %v3173_v18 }
  0xda   :  { %2940 = vmatprep.subr.bf16.mxu1 %v3207_v62 }
  0xdd   :  { %2941 = vmatpush3.bf16.msra.mxu1 %v3174_v24  ;;  %v3184_v24 = vld [vmem:[%s3998_s4] sm:$0xff]  }
  0xde   :  { %2942 = vmatprep.subr.bf16.mxu1 %v3207_v62 }
  0xe3   :  { %v2647_v48 = vpop.f32.mrf.mxu0 }
  0xe4   :  { %v2669_v49 = vpop.f32.mrf.mxu1 }
  0xe5   :  { %v2648_v51 = vpop.f32.mrf.mxu0 }
  0xe6   :  { %v2670_v52 = vpop.f32.mrf.mxu1  ;;  %v2649_v53 = vadd.f32 %v2648_v51, %v2647_v48 }
  0xe7   :  { %v2671_v54 = vadd.f32 %v2670_v52, %v2669_v49  ;;  %v2650_v55 = vpop.f32.mrf.mxu0 }
  0xe8   :  { %v2672_v56 = vpop.f32.mrf.mxu1  ;;  %v1649_v57 = vadd.f32 %v2649_v53, %v2414_v50 }
  0xe9   :  { %v2651_v58 = vpop.f32.mrf.mxu0 }
  0xea   :  { %v2673_v59 = vpop.f32.mrf.mxu1  ;;  %v1689_v60 = vadd.f32 %v2671_v54, %v1649_v57 }
 0x103   :  { %v2691_v63 = vpop.f32.mrf.mxu0 }
 0x104   :  { %v2713_v0 = vpop.f32.mrf.mxu1 }
 0x105   :  { %v2692_v1 = vpop.f32.mrf.mxu0 }
 0x106   :  { %v2693_v2 = vadd.f32 %v2692_v1, %v2691_v63  ;;  %v2714_v3 = vpop.f32.mrf.mxu1 }
 0x107   :  { %v2715_v4 = vadd.f32 %v2714_v3, %v2713_v0  ;;  %v2694_v5 = vpop.f32.mrf.mxu0 }
 0x108   :  { %v1729_v6 = vadd.f32 %v2693_v2, %v1689_v60  ;;  %v2716_v7 = vpop.f32.mrf.mxu1 }
 0x109   :  { %v2695_v8 = vpop.f32.mrf.mxu0  ;;  %v3175_v7 = vld [vmem:[%s3997_s3 + $0x8] sm:$0xff]  }
 0x10a   :  { %v1769_v10 = vadd.f32 %v2715_v4, %v1729_v6  ;;  %v2717_v11 = vpop.f32.mrf.mxu1  ;;  %2943 = vmatpush3.bf16.msra.mxu1 %v3175_v7  ;;  %v3176_v8 = vld [vmem:[%s3997_s3] sm:$0xff]  }
 0x10b   :  { %2944 = vmatprep.subr.bf16.mxu1 %v3207_v62  ;;  %v3179_v11 = vld [vmem:[%s3998_s4 + $0x28] sm:$0xff]  }
 0x10e   :  { %2945 = vmatpush3.bf16.msra.mxu1 %v3176_v8 }
 0x123   :  { %v2735_v19 = vpop.f32.mrf.mxu0 }
 0x124   :  { %v2757_v20 = vpop.f32.mrf.mxu1 }
 0x125   :  { %v2736_v21 = vpop.f32.mrf.mxu0 }
 0x126   :  { %v2737_v22 = vadd.f32 %v2736_v21, %v2735_v19  ;;  %v2758_v23 = vpop.f32.mrf.mxu1 }
 0x127   :  { %v2759_v25 = vadd.f32 %v2758_v23, %v2757_v20  ;;  %v2738_v26 = vpop.f32.mrf.mxu0  ;;  %v3183_v23 = vld [vmem:[%s3998_s4 + $0x8] sm:$0xff]  }
 0x128   :  { %v1809_v27 = vadd.f32 %v2737_v22, %v1769_v10  ;;  %v2760_v28 = vpop.f32.mrf.mxu1  ;;  %v3178_v10 = vld [vmem:[%s3998_s4 + $0x30] sm:$0xff]   ;;  %s3185_s4 = scalar_lea.vmem %s2407_s15, 128 }
 0x129   :  { %v2739_v29 = vpop.f32.mrf.mxu0  ;;  %p3186_p0 = scmp.ne.s32.totalorder %s2407_s15, %s3185_s4  ;;  %p3191_p2 = scmp.lt.s32.totalorder %s3185_s4, %s3185_s4 }
 0x12a   :  { %v1849_v30 = vadd.f32 %v2759_v25, %v1809_v27  ;;  %v2761_v31 = vpop.f32.mrf.mxu1  ;;  %v2613_v25 = vld [vmem:[%s3999_s5 + $0x2] ss:$0 sm:$0xff] }
 0x12b   :  { %p3192_p3 = por %p3191_p2, %p3190_p1 }
 0x12d   :  { %p3193_p4 = pnand %p3192_p3, %p3186_p0 }
 0x143   :  { %v2779_v32 = vpop.f32.mrf.mxu0 }
 0x144   :  { %v2801_v33 = vpop.f32.mrf.mxu1 }
 0x145   :  { %v2780_v34 = vpop.f32.mrf.mxu0 }
 0x146   :  { %v2802_v35 = vpop.f32.mrf.mxu1  ;;  %v2781_v48 = vadd.f32 %v2780_v34, %v2779_v32 }
 0x147   :  { %v2782_v36 = vpop.f32.mrf.mxu0  ;;  %v2803_v50 = vadd.f32 %v2802_v35, %v2801_v33 }
 0x148   :  { %v2804_v37 = vpop.f32.mrf.mxu1  ;;  %v1889_v49 = vadd.f32 %v2781_v48, %v1849_v30 }
 0x149   :  { %v2783_v38 = vpop.f32.mrf.mxu0 }
 0x14a   :  { %v2805_v39 = vpop.f32.mrf.mxu1  ;;  %v1929_v52 = vadd.f32 %v2803_v50, %v1889_v49 }
 0x163   :  { %v2823_v40 = vpop.f32.mrf.mxu0 }
 0x164   :  { %v2845_v41 = vpop.f32.mrf.mxu1 }
 0x165   :  { %v2824_v42 = vpop.f32.mrf.mxu0 }
 0x166   :  { %v2846_v43 = vpop.f32.mrf.mxu1  ;;  %v2825_v51 = vadd.f32 %v2824_v42, %v2823_v40 }
 0x167   :  { %v2826_v44 = vpop.f32.mrf.mxu0  ;;  %v2847_v54 = vadd.f32 %v2846_v43, %v2845_v41 }
 0x168   :  { %v2848_v45 = vpop.f32.mrf.mxu1  ;;  %v1969_v53 = vadd.f32 %v2825_v51, %v1929_v52 }
 0x169   :  { %v2827_v46 = vpop.f32.mrf.mxu0 }
 0x16a   :  { %v2849_v47 = vpop.f32.mrf.mxu1  ;;  %v2009_v58 = vadd.f32 %v2847_v54, %v1969_v53 }
 0x183   :  { %v2867_v55 = vpop.f32.mrf.mxu0 }
 0x184   :  { %v2889_v56 = vpop.f32.mrf.mxu1 }
 0x185   :  { %v2868_v57 = vpop.f32.mrf.mxu0 }
 0x186   :  { %v2869_v59 = vadd.f32 %v2868_v57, %v2867_v55  ;;  %v2890_v60 = vpop.f32.mrf.mxu1 }
 0x187   :  { %v2870_v61 = vpop.f32.mrf.mxu0  ;;  %v2891_v0 = vadd.f32 %v2890_v60, %v2889_v56 }
 0x188   :  { %v2049_v63 = vadd.f32 %v2869_v59, %v2009_v58  ;;  %v2892_v1 = vpop.f32.mrf.mxu1 }
 0x189   :  { %v2871_v2 = vpop.f32.mrf.mxu0 }
 0x18a   :  { %v2089_v3 = vadd.f32 %v2891_v0, %v2049_v63  ;;  %v2893_v4 = vpop.f32.mrf.mxu1 }
 0x18c   :  { %v2094_v5 = vmax.f32 %v2089_v3, 0.0 }
 0x18e   :  { %v2095_v6 = vpack.c.bf16 %v2094_v5, %v2094_v5 }
 0x190   :  { %2927 = vmatmul.mubr.msk.bf16.vlgmr.msra.gmra.mxu0 %vm2133_vm1, %v2095_v6 }
 0x191   :  { %2966 = vmatprep.mubr.msk.bf16.mxu0 %vm3208_vm0, %v3207_v62  ;;  %2951 = vmatpush3.bf16.msra.mxu0 %v3177_v9 }
 0x192   :  { %2952 = vmatprep.subr.bf16.mxu0 %v3207_v62 }
 0x195   :  { %2953 = vmatpush3.bf16.msra.mxu0 %v3178_v10 }
 0x196   :  { %2954 = vmatprep.subr.bf16.mxu0 %v3207_v62 }
 0x199   :  { %2955 = vmatpush3.bf16.msra.mxu0 %v3179_v11 }
 0x19a   :  { %2956 = vmatprep.subr.bf16.mxu0 %v3207_v62 }
 0x19d   :  { %2957 = vmatpush3.bf16.msra.mxu0 %v3180_v12 }
 0x19e   :  { %2958 = vmatprep.subr.bf16.mxu0 %v3207_v62 }
 0x1a1   :  { %2959 = vmatpush3.bf16.msra.mxu0 %v3181_v13 }
 0x1a2   :  { %2960 = vmatprep.subr.bf16.mxu0 %v3207_v62 }
 0x1a5   :  { %2961 = vmatpush3.bf16.msra.mxu0 %v3182_v14 }
 0x1a6   :  { %2962 = vmatprep.subr.bf16.mxu0 %v3207_v62 }
 0x1a9   :  { %2963 = vmatpush3.bf16.msra.mxu0 %v3183_v23 }
 0x1aa   :  { %2964 = vmatprep.subr.bf16.mxu0 %v3207_v62  ;;  %v2622_v62 = vld [vmem:[%s3999_s5 + $0x3] ss:$0 sm:$0xff] }
 0x1ad   :  { %2965 = vmatpush3.bf16.msra.mxu0 %v3184_v24 }
 0x250   :  { %v2171_v16 = vpop.f32.mrf.mxu0 }
 0x251   :  { %v2172_v17 = vadd.f32 %v2607_v15, %v2171_v16 }
 0x252   :  { %v2928_v18 = vpop.f32.mrf.mxu0 }
 0x253   :  { %v2177_v19 = vmax.f32 %v2172_v17, 0.0 }
 0x254   :  { %v2174_v20 = vpop.f32.mrf.mxu0 }
 0x255   :  { %v2178_v21 = vpack.c.bf16 %v2177_v19, %v2177_v19 }
 0x256   :  { %v2929_v22 = vpop.f32.mrf.mxu0 }
 0x257   :  { %2947 = vmatmul.mubr.bf16.vlgmr.msra.gmra.mxu1 %v2178_v21 }
 0x317   :  { %v2282_v26 = vpop.f32.mrf.mxu1 }
 0x318   :  { %v2283_v27 = vadd.f32 %v2613_v25, %v2282_v26 }
 0x319   :  { %v2948_v28 = vpop.f32.mrf.mxu1 }
 0x31a   :  { %v2288_v29 = vmax.f32 %v2283_v27, 0.0 }
 0x31b   :  { %v2285_v30 = vpop.f32.mrf.mxu1 }
 0x31c   :  { %v2289_v31 = vpack.c.bf16 %v2288_v29, %v2288_v29 }
 0x31d   :  { %v2949_v32 = vpop.f32.mrf.mxu1 }
 0x31e   :  { %2967 = vmatmul.mubr.bf16.vlgmr.msra.gmra.mxu0 %v2289_v31 }
 0x3de   :  { %v2393_v33 = vpop.f32.mrf.mxu0 }
 0x3df   :  { %v2394_v34 = vadd.f32 %v2622_v62, %v2393_v33 }
 0x3e0   :  { %v2968_v35 = vpop.f32.mrf.mxu0 }
 0x3e1   :  { %2399 = vst [vmem:[#allocation2] sm:$0xff] %v2394_v34 }
 0x3e2   :  { %v2396_v36 = vpop.f32.mrf.mxu0 }
 0x3e3   :  { %3196 = shalt.err (!%p3193_p4)
}
 0x3e4   :  { %2409 = dma.vmem_to_hbm [thread:$0]  %s2407_s15, 128, %s4000_s6, [#allocation3]   ;;  %v2969_v37 = vpop.f32.mrf.mxu0 }
 0x3e5   :  { %3205 = dma.done.wait [#allocation3], 128  }
 0x3e6   :  { %3206 = vsyncadd [#allocation3], 4294967168 }
 0x3e7   :  { %2413 = vsyncpa [#allocation3], 1 }

</bundles_post_ra>
